<compile_context>
chip_gen: v6e
topology: v6e:2x2x1
jax: 0.10.0
libtpu: 0.0.40
codegen_flags: <defaults>
</compile_context>

<pallas_src>
import functools

import jax
import jax.numpy as jnp
from jax.experimental import pallas as pl
from jax.experimental.pallas import tpu as pltpu


def _cdiv(a, b):
    return -(-a // b)


def _round_up(x, m):
    return _cdiv(x, m) * m


def _pick_tile(dim, max_tile, min_granule, pref_granule):
    """Pick a tile from the tile count (avoids ~2x padding just past a tile
    boundary) and round it to a hardware-friendly granule."""
    n_tiles = max(1, _cdiv(dim, max_tile))
    tile = _cdiv(dim, n_tiles)
    granule = pref_granule if tile >= pref_granule else min_granule
    return _round_up(tile, granule)


def _tpu_defaults():
    """Generation-specific tile caps / scoped-VMEM budget."""
    try:
        kind = jax.devices()[0].device_kind.lower()
    except Exception:  # pragma: no cover - defensive
        kind = ""
    if "v7" in kind or "7x" in kind:
        # 64 MiB VMEM/TC but ~3.2 TB/s HBM: ~1024 reuse tiles already hit the
        # compute roofline; cap scoped VMEM well under 64 MiB.
        return dict(tm_max=1024, tn_max=1024, tk_max=1024,
                    vmem_limit=48 * 1024 * 1024, pref_granule=256)
    if "v6" in kind:
        # Worst BW:FLOP ratio (~1.4 TB/s vs 918 TF/s): needs the biggest
        # reuse tiles its 128 MiB VMEM allows.
        return dict(tm_max=2048, tn_max=2048, tk_max=1024,
                    vmem_limit=96 * 1024 * 1024, pref_granule=256)
    if "v5" in kind:
        # 197 TF/s, ~0.82 TB/s: near roofline already at ~512-1024 bf16 tiles;
        # MXU granule is 128, don't inflate tiles further.
        return dict(tm_max=1024, tn_max=1024, tk_max=512,
                    vmem_limit=96 * 1024 * 1024, pref_granule=128)
    # Unknown backend: conservative defaults that fit a 64 MiB VMEM budget.
    return dict(tm_max=1024, tn_max=1024, tk_max=512,
                vmem_limit=48 * 1024 * 1024, pref_granule=256)


# ---------------------------------------------------------------------------
# Kernels
# ---------------------------------------------------------------------------

def _fp32_to_bf16_kernel(x_ref, o_ref):
    """fp32_to_float16 (pipeline-first-stage input conversion), one shot."""
    o_ref[...] = x_ref[...].astype(jnp.bfloat16)


def _bf16_linear_kernel(x_ref, w_ref, b_ref, o_ref):
    """x_ref: [tm, tk] bf16, w_ref: [tk, tn] bf16, b_ref: [1, tn] bf16,
    o_ref:  [tm, tn] f32 — revisited across the K axis, so it doubles as the
    fp32 accumulator (no separate VMEM scratch)."""
    k = pl.program_id(2)

    @pl.when(k == 0)
    def _():
        o_ref[...] = jnp.zeros_like(o_ref)

    # Wrapped module (Linear) in bf16: fp32 MXU accumulation across K.
    o_ref[...] += jnp.dot(x_ref[...], w_ref[...],
                          preferred_element_type=jnp.float32)

    @pl.when(k == pl.num_programs(2) - 1)
    def _():
        # Single bf16 round-trip of the fully accumulated fp32 result, then a
        # bf16 bias add (matches torch bf16 Linear / _ref_forward numerics).
        # TODO(synk): if fused-addmm numerics (bias added in fp32 before the
        # cast) are wanted instead, move the bias add above the .astype.
        y_bf16 = o_ref[...].astype(jnp.bfloat16) + b_ref[...]
        # float16_to_fp32 (pipeline-last-stage output conversion).
        o_ref[...] = y_bf16.astype(jnp.float32)


# ---------------------------------------------------------------------------
# Wrappers
# ---------------------------------------------------------------------------

def prepare_float16_module_params(weight_fp32, bias_fp32):
    """Construction-time work of Float16Module: module.bfloat16() plus a
    one-time [N, K] (torch Linear layout) -> [K, N] layout change so the
    per-call forward never re-reads/re-writes the weight for a transpose."""
    w_kn_bf16 = jnp.transpose(weight_fp32.astype(jnp.bfloat16), (1, 0))
    b_bf16 = bias_fp32.astype(jnp.bfloat16)
    return w_kn_bf16, b_bf16


def _cast_inputs_to_bf16(x2d_fp32, tm, tk, vmem_limit):
    """One-shot fp32 -> bf16 cast of the (padded) activations."""
    m_pad, k_pad = x2d_fp32.shape
    grid = (m_pad // tm, k_pad // tk)
    return pl.pallas_call(
        _fp32_to_bf16_kernel,
        out_shape=jax.ShapeDtypeStruct((m_pad, k_pad), jnp.bfloat16),
        grid_spec=pltpu.PrefetchScalarGridSpec(
            num_scalar_prefetch=0,
            grid=grid,
            in_specs=[pl.BlockSpec((tm, tk), lambda i, k: (i, k))],
            out_specs=pl.BlockSpec((tm, tk), lambda i, k: (i, k)),
        ),
        compiler_params=pltpu.CompilerParams(
            dimension_semantics=("parallel", "parallel"),
            vmem_limit_bytes=vmem_limit,
        ),
        cost_estimate=pl.CostEstimate(
            flops=0,
            transcendentals=0,
            bytes_accessed=4 * m_pad * k_pad + 2 * m_pad * k_pad,
        ),
    )(x2d_fp32)


def float16_module_forward(x_fp32, w_kn_bf16, bias_bf16, *,
                           tm_max=None, tn_max=None, tk_max=None,
                           vmem_limit_bytes=None):
    """Float16Module(Linear).forward.

    x_fp32:     [batch, seq, K] float32
    w_kn_bf16:  [K, N]          bfloat16 (pre-transposed at construction)
    bias_bf16:  [N]             bfloat16
    returns:    [batch, seq, N] float32
    """
    cfg = _tpu_defaults()
    tm_max = tm_max if tm_max is not None else cfg["tm_max"]
    tn_max = tn_max if tn_max is not None else cfg["tn_max"]
    tk_max = tk_max if tk_max is not None else cfg["tk_max"]
    vmem_limit = (vmem_limit_bytes if vmem_limit_bytes is not None
                  else cfg["vmem_limit"])
    pref_gran = cfg["pref_granule"]

    batch, seq, k_dim = x_fp32.shape
    k_w, n_dim = w_kn_bf16.shape
    assert k_w == k_dim, "weight inner dim must match activation hidden dim"
    m_dim = batch * seq

    # Tile sizes: tm is a multiple of 16 (bf16 sublane packing of x), tn/tk
    # multiples of 128 (lane granule); large tiles rounded to the MXU-filling
    # granule (256 on v6e/v7x, 128 on v5e).
    tm = _pick_tile(m_dim, tm_max, 16, pref_gran)
    tn = _pick_tile(n_dim, tn_max, 128, pref_gran)
    tk = _pick_tile(k_dim, tk_max, 128, pref_gran)

    m_pad = _round_up(m_dim, tm)
    n_pad = _round_up(n_dim, tn)
    k_pad = _round_up(k_dim, tk)

    x2d = x_fp32.reshape(m_dim, k_dim)
    if (m_pad, k_pad) != (m_dim, k_dim):
        x2d = jnp.pad(x2d, ((0, m_pad - m_dim), (0, k_pad - k_dim)))
    # fp32_to_float16 on inputs, once, so the matmul streams bf16 activations.
    x2d_bf16 = _cast_inputs_to_bf16(x2d, tm, tk, vmem_limit)

    w = w_kn_bf16
    if (k_pad, n_pad) != (k_dim, n_dim):
        w = jnp.pad(w, ((0, k_pad - k_dim), (0, n_pad - n_dim)))
    b2d = bias_bf16.reshape(1, n_dim)
    if n_pad != n_dim:
        b2d = jnp.pad(b2d, ((0, 0), (0, n_pad - n_dim)))

    grid = (m_pad // tm, n_pad // tn, k_pad // tk)

    out2d = pl.pallas_call(
        _bf16_linear_kernel,
        out_shape=jax.ShapeDtypeStruct((m_pad, n_pad), jnp.float32),
        grid_spec=pltpu.PrefetchScalarGridSpec(
            num_scalar_prefetch=0,
            grid=grid,
            in_specs=[
                pl.BlockSpec((tm, tk), lambda i, j, k: (i, k)),
                pl.BlockSpec((tk, tn), lambda i, j, k: (k, j)),
                pl.BlockSpec((1, tn), lambda i, j, k: (0, j)),
            ],
            out_specs=pl.BlockSpec((tm, tn), lambda i, j, k: (i, j)),
        ),
        compiler_params=pltpu.CompilerParams(
            dimension_semantics=("parallel", "parallel", "arbitrary"),
            vmem_limit_bytes=vmem_limit,
        ),
        cost_estimate=pl.CostEstimate(
            flops=2 * m_pad * n_pad * k_pad,
            # Include the grid-implied re-reads (x once per N-tile, w once per
            # M-tile) plus the fp32 output writeback.
            bytes_accessed=(2 * m_pad * k_pad * (n_pad // tn)
                            + 2 * k_pad * n_pad * (m_pad // tm)
                            + 4 * m_pad * n_pad),
            transcendentals=0,
        ),
    )(x2d_bf16, w, b2d)

    out2d = out2d[:m_dim, :n_dim]
    return out2d.reshape(batch, seq, n_dim)


def _ref_forward(x_fp32, w_kn_bf16, bias_bf16):
    """Plain-JAX reference with the same bf16 Linear semantics."""
    batch, seq, k_dim = x_fp32.shape
    n_dim = w_kn_bf16.shape[1]
    x_bf16 = x_fp32.astype(jnp.bfloat16).reshape(batch * seq, k_dim)
    y = jnp.dot(x_bf16, w_kn_bf16, preferred_element_type=jnp.float32)
    y = (y.astype(jnp.bfloat16) + bias_bf16).astype(jnp.float32)
    return y.reshape(batch, seq, n_dim)


if __name__ == "__main__":
    # TODO(synk): state_dict / load_state_dict / set_input_tensor and the
    # pipeline-stage bookkeeping of Float16Module have no kernel equivalent;
    # only the numerical forward path (input downcast -> bf16 Linear ->
    # output upcast) is implemented.
    key = jax.random.PRNGKey(0)
    forward = jax.jit(functools.partial(float16_module_forward))

    test_shapes = [
        (2, 8, 32, 32),        # small shape (exercises the padding path)
        (4, 256, 1024, 1024),  # exercises the (M, N, K) grid + K accumulation
    ]

    for batch, seq, hidden_in, hidden_out in test_shapes:
        key, kx, kw, kb = jax.random.split(key, 4)
        x = jax.random.normal(kx, (batch, seq, hidden_in), dtype=jnp.float32)
        weight_nk = jax.random.normal(kw, (hidden_out, hidden_in),
                                      dtype=jnp.float32) * 0.02
        bias = jax.random.normal(kb, (hidden_out,), dtype=jnp.float32) * 0.02

        # Construction-time cast + layout fix (done once, not per forward).
        w_kn_bf16, b_bf16 = prepare_float16_module_params(weight_nk, bias)

        out = forward(x, w_kn_bf16, b_bf16)
        jax.block_until_ready(out)

        ref = _ref_forward(x, w_kn_bf16, b_bf16)
        assert out.dtype == jnp.float32
        assert out.shape == (batch, seq, hidden_out)
        assert jnp.allclose(out, ref, atol=2e-2, rtol=2e-2), (
            f"mismatch at shape {(batch, seq, hidden_in, hidden_out)}")

    print("KERNEL_OK")
</pallas_src>

<mosaic_0001>
module attributes {stable_mosaic.version = 11 : i64} {
  func.func @_fp32_to_bf16_kernel(%arg0: i32, %arg1: i32, %arg2: memref<16x128xf32, #tpu.memory_space<vmem>>, %arg3: memref<16x128xbf16, #tpu.memory_space<vmem>>) attributes {dimension_semantics = [#tpu.dimension_semantics<parallel>, #tpu.dimension_semantics<parallel>], iteration_bounds = array<i64: 1, 1>, scalar_prefetch = 0 : i64, scratch_operands = 0 : i64, tpu.core_type = #tpu.core_type<tc>, window_params = [{transform_indices = @transform_0, window_bounds = array<i64: 16, 128>}, {transform_indices = @transform_1, window_bounds = array<i64: 16, 128>}]} {
    %c0 = arith.constant 0 : index
    %c0_0 = arith.constant 0 : index
    %0 = vector.load %arg2[%c0, %c0_0] : memref<16x128xf32, #tpu.memory_space<vmem>>, vector<16x128xf32>
    %1 = arith.truncf %0 : vector<16x128xf32> to vector<16x128xbf16>
    %c0_1 = arith.constant 0 : index
    %c0_2 = arith.constant 0 : index
    %2 = vector.load %arg3[%c0_1, %c0_2] : memref<16x128xbf16, #tpu.memory_space<vmem>>, vector<16x128xbf16>
    tpu.vector_store %arg3[%c0_1, %c0_2], %1 {strides = array<i32>} : memref<16x128xbf16, #tpu.memory_space<vmem>>, vector<16x128xbf16>,
    return
  }
  func.func @transform_0(%arg0: i32, %arg1: i32) -> (i32, i32) {
    %c0_i32 = arith.constant 0 : i32
    return %arg0, %arg1 : i32, i32
  }
  func.func @transform_1(%arg0: i32, %arg1: i32) -> (i32, i32) {
    %c0_i32 = arith.constant 0 : i32
    return %arg0, %arg1 : i32, i32
  }
}

module attributes {stable_mosaic.version = 11 : i64} {
  func.func @_bf16_linear_kernel(%arg0: i32, %arg1: i32, %arg2: i32, %arg3: memref<16x128xbf16, #tpu.memory_space<vmem>>, %arg4: memref<128x128xbf16, #tpu.memory_space<vmem>>, %arg5: memref<1x128xbf16, #tpu.memory_space<vmem>>, %arg6: memref<16x128xf32, #tpu.memory_space<vmem>>) attributes {dimension_semantics = [#tpu.dimension_semantics<parallel>, #tpu.dimension_semantics<parallel>, #tpu.dimension_semantics<arbitrary>], iteration_bounds = array<i64: 1, 1, 1>, scalar_prefetch = 0 : i64, scratch_operands = 0 : i64, tpu.core_type = #tpu.core_type<tc>, window_params = [{transform_indices = @transform_0, window_bounds = array<i64: 16, 128>}, {transform_indices = @transform_1, window_bounds = array<i64: 128, 128>}, {transform_indices = @transform_2, window_bounds = array<i64: 1, 128>}, {transform_indices = @transform_3, window_bounds = array<i64: 16, 128>}]} {
    %c0_i32 = arith.constant 0 : i32
    %0 = arith.cmpi eq, %arg2, %c0_i32 : i32
    %1 = arith.extui %0 : i1 to i32
    %c0_i32_0 = arith.constant 0 : i32
    %2 = arith.cmpi ne, %1, %c0_i32_0 : i32
    scf.if %2 {
      %cst_10 = arith.constant 0.000000e+00 : f32
      %12 = vector.broadcast %cst_10 : f32 to vector<16x128xf32>
      %c0_11 = arith.constant 0 : index
      %c0_12 = arith.constant 0 : index
      %13 = vector.load %arg6[%c0_11, %c0_12] : memref<16x128xf32, #tpu.memory_space<vmem>>, vector<16x128xf32>
      tpu.vector_store %arg6[%c0_11, %c0_12], %12 {strides = array<i32>} : memref<16x128xf32, #tpu.memory_space<vmem>>, vector<16x128xf32>,
    } else {
    }
    %c0 = arith.constant 0 : index
    %c0_1 = arith.constant 0 : index
    %3 = vector.load %arg6[%c0, %c0_1] : memref<16x128xf32, #tpu.memory_space<vmem>>, vector<16x128xf32>
    %c0_2 = arith.constant 0 : index
    %c0_3 = arith.constant 0 : index
    %4 = vector.load %arg3[%c0_2, %c0_3] : memref<16x128xbf16, #tpu.memory_space<vmem>>, vector<16x128xbf16>
    %c0_4 = arith.constant 0 : index
    %c0_5 = arith.constant 0 : index
    %5 = vector.load %arg4[%c0_4, %c0_5] : memref<128x128xbf16, #tpu.memory_space<vmem>>, vector<128x128xbf16>
    %cst = arith.constant dense<0.000000e+00> : vector<16x128xf32>
    %6 = tpu.matmul %4, %5, %cst {dimension_numbers = #tpu.dot_dimension_numbers<[1], [0], [0], [1], [0, 0, 1, 1], [], []>} : vector<16x128xbf16>, vector<128x128xbf16>, vector<16x128xf32> -> vector<16x128xf32>
    %7 = arith.addf %3, %6 : vector<16x128xf32>
    %c0_6 = arith.constant 0 : index
    %c0_7 = arith.constant 0 : index
    %8 = vector.load %arg6[%c0_6, %c0_7] : memref<16x128xf32, #tpu.memory_space<vmem>>, vector<16x128xf32>
    tpu.vector_store %arg6[%c0_6, %c0_7], %7 {strides = array<i32>} : memref<16x128xf32, #tpu.memory_space<vmem>>, vector<16x128xf32>,
    %c0_i32_8 = arith.constant 0 : i32
    %9 = arith.cmpi eq, %arg2, %c0_i32_8 : i32
    %10 = arith.extui %9 : i1 to i32
    %c0_i32_9 = arith.constant 0 : i32
    %11 = arith.cmpi ne, %10, %c0_i32_9 : i32
    scf.if %11 {
      %c0_10 = arith.constant 0 : index
      %c0_11 = arith.constant 0 : index
      %12 = vector.load %arg6[%c0_10, %c0_11] : memref<16x128xf32, #tpu.memory_space<vmem>>, vector<16x128xf32>
      %13 = arith.truncf %12 : vector<16x128xf32> to vector<16x128xbf16>
      %c0_12 = arith.constant 0 : index
      %c0_13 = arith.constant 0 : index
      %14 = vector.load %arg5[%c0_12, %c0_13] : memref<1x128xbf16, #tpu.memory_space<vmem>>, vector<1x128xbf16>
      %15 = vector.broadcast %14 : vector<1x128xbf16> to vector<16x128xbf16>
      %16 = arith.addf %13, %15 : vector<16x128xbf16>
      %17 = arith.extf %16 : vector<16x128xbf16> to vector<16x128xf32>
      %c0_14 = arith.constant 0 : index
      %c0_15 = arith.constant 0 : index
      %18 = vector.load %arg6[%c0_14, %c0_15] : memref<16x128xf32, #tpu.memory_space<vmem>>, vector<16x128xf32>
      tpu.vector_store %arg6[%c0_14, %c0_15], %17 {strides = array<i32>} : memref<16x128xf32, #tpu.memory_space<vmem>>, vector<16x128xf32>,
    } else {
    }
    return
  }
  func.func @transform_0(%arg0: i32, %arg1: i32, %arg2: i32) -> (i32, i32) {
    %c0_i32 = arith.constant 0 : i32
    return %arg0, %arg2 : i32, i32
  }
  func.func @transform_1(%arg0: i32, %arg1: i32, %arg2: i32) -> (i32, i32) {
    %c0_i32 = arith.constant 0 : i32
    return %arg2, %arg1 : i32, i32
  }
  func.func @transform_2(%arg0: i32, %arg1: i32, %arg2: i32) -> (i32, i32) {
    %c0_i32 = arith.constant 0 : i32
    %c0_i32_0 = arith.constant 0 : i32
    return %c0_i32, %arg1 : i32, i32
  }
  func.func @transform_3(%arg0: i32, %arg1: i32, %arg2: i32) -> (i32, i32) {
    %c0_i32 = arith.constant 0 : i32
    return %arg0, %arg1 : i32, i32
  }
}

</mosaic_0001>

<bundles_post_ra>
// kernel: float16_module_forward.2
= control target key start
LH: loop header
LB: loop body
LE: loop exit
PB: predicated region body
PF: predicated region fallthrough
CT: control target
= control target key end

     0   :  { %s52_s0 = inlined_call_operand.vmem [shape: f32[16,128], index: 0, kind: input, shape index: {}]   ;;  %s53_s1 = inlined_call_operand.vmem [shape: bf16[16,128], index: 1, kind: output, shape index: {}]  }
   0x1   :  { %v8_v0 = vld [vmem:[%s52_s0] sm:$0xff]  ;;  %v9_v1 = vld [vmem:[%s52_s0 + $0x8] sm:$0xff] }
   0x2   :  { %v31_v2 = vpack.c.bf16 %v9_v1, %v8_v0 }
   0x4   :  { %32 = vst [vmem:[%s53_s1] sm:$0xff] %v31_v2  }

// kernel: float16_module_forward.3
= control target key start
LH: loop header
LB: loop body
LE: loop exit
PB: predicated region body
PF: predicated region fallthrough
CT: control target
= control target key end

     0   :  { %v212_v0 = vmov 0.0   ;;  %vm213_vm0 = vmmov 0   ;;  %v150_v10 = vlaneseq  ;;  %s270_s1 = inlined_call_operand.vmem [shape: bf16[128,128], index: 1, kind: input, shape index: {}]   ;;  %s271_s0 = inlined_call_operand.vmem [shape: bf16[16,128], index: 0, kind: input, shape index: {}]   ;;  %s272_s2 = inlined_call_operand.vmem [shape: bf16[1,128], index: 2, kind: input, shape index: {}]   ;;  %s273_s3 = inlined_call_operand.vmem [shape: f32[16,128], index: 3, kind: output, shape index: {}]  }
   0x1   :  { %181 = vmatprep.subr.bf16.mxu0 %v212_v0  ;;  %v203_v1 = vld [vmem:[%s270_s1 + $0x38] sm:$0xff]   ;;  %197 = vmatprep.mubr.msk.bf16.mxu0 %vm213_vm0, %v212_v0  ;;  %v204_v2 = vld [vmem:[%s270_s1 + $0x30] sm:$0xff]   ;;  %v205_v3 = vld [vmem:[%s270_s1 + $0x28] sm:$0xff]  }
   0x2   :  { %182 = vmatpush3.bf16.msra.mxu0 %v203_v1  ;;  %v206_v4 = vld [vmem:[%s270_s1 + $0x20] sm:$0xff]   ;;  %v207_v5 = vld [vmem:[%s270_s1 + $0x18] sm:$0xff]   ;;  %v208_v6 = vld [vmem:[%s270_s1 + $0x10] sm:$0xff]   ;;  %v151_v11 = vshrl.u32 %v150_v10, 7 }
   0x3   :  { %183 = vmatprep.subr.bf16.mxu0 %v212_v0  ;;  %v209_v7 = vld [vmem:[%s270_s1 + $0x8] sm:$0xff]   ;;  %v210_v8 = vld [vmem:[%s270_s1] sm:$0xff]  }
   0x4   :  { %v211_v9 = vld [vmem:[%s271_s0] sm:$0xff]   ;;  %v152_v15 = vsub.s32 0, %v151_v11 }
   0x5   :  { %v146_v12 = vld [vmem:[%s272_s2] sm:$0x1] }
   0x6   :  { %184 = vmatpush3.bf16.msra.mxu0 %v204_v2  ;;  %v148_v14 = vpack.i.b16 %v146_v12, %v146_v12 }
   0x7   :  { %185 = vmatprep.subr.bf16.mxu0 %v212_v0 }
   0x8   :  { %v153_v18 = vrot.slane %v148_v14, %v152_v15 }
   0xa   :  { %186 = vmatpush3.bf16.msra.mxu0 %v205_v3 }
   0xb   :  { %187 = vmatprep.subr.bf16.mxu0 %v212_v0 }
   0xe   :  { %188 = vmatpush3.bf16.msra.mxu0 %v206_v4 }
   0xf   :  { %189 = vmatprep.subr.bf16.mxu0 %v212_v0 }
  0x12   :  { %190 = vmatpush3.bf16.msra.mxu0 %v207_v5 }
  0x13   :  { %191 = vmatprep.subr.bf16.mxu0 %v212_v0 }
  0x16   :  { %192 = vmatpush3.bf16.msra.mxu0 %v208_v6 }
  0x17   :  { %193 = vmatprep.subr.bf16.mxu0 %v212_v0 }
  0x1a   :  { %194 = vmatpush3.bf16.msra.mxu0 %v209_v7 }
  0x1b   :  { %195 = vmatprep.subr.bf16.mxu0 %v212_v0 }
  0x1e   :  { %196 = vmatpush3.bf16.msra.mxu0 %v210_v8 }
  0x21   :  { %198 = vmatmul.mubr.bf16.vlgmr.msra.gmra.mxu0 %v211_v9 }
  0xe1   :  { %v129_v13 = vpop.f32.mrf.mxu0 }
  0xe3   :  { %v199_v16 = vpop.f32.mrf.mxu0 }
  0xe5   :  { %v132_v17 = vpop.f32.mrf.mxu0 }
  0xe6   :  { %v145_v20 = vpack.c.bf16 %v132_v17, %v129_v13 }
  0xe7   :  { %v200_v19 = vpop.f32.mrf.mxu0 }
  0xe8   :  { %v154_v21 = vadd.bf16 %v153_v18, %v145_v20 }
  0xea   :  { %v155_v22 = vunpack.c.l.bf16 %v154_v21  ;;  %v156_v23 = vunpack.c.h.bf16 %v154_v21 }
  0xec   :  { %157 = vst [vmem:[%s273_s3] sm:$0xff] %v155_v22  ;;  %158 = vst [vmem:[%s273_s3 + $0x8] sm:$0xff] %v156_v23 }

</bundles_post_ra>
